<compile_context>
chip_gen: v5e
topology: v5e:2x2
jax: 0.10.0
libtpu: 0.0.40
codegen_flags: <defaults>
</compile_context>

<pallas_src>
import numpy as np
import jax
import jax.numpy as jnp
from jax import lax
from jax.experimental import pallas as pl
from jax.experimental.pallas import tpu as pltpu


_VMEM_LIMIT = 48 * 1024 * 1024  # > v5e 16MiB default, < v7x 64MiB physical


def _round_up(x, m):
    return ((x + m - 1) // m) * m


# ----------------------------------------------------------------------------
# Kernel 1: fused QKV projection — one lane-dense matmul, row-tiled.
# ----------------------------------------------------------------------------
def _qkv_fused_kernel(x_ref, w_ref, y_ref):
    y_ref[...] = jnp.dot(x_ref[...], w_ref[...], preferred_element_type=jnp.float32)


def qkv_projection_fused(x_pad, w_all, tm):
    T_pad, d_model = x_pad.shape
    C = w_all.shape[-1]
    return pl.pallas_call(
        _qkv_fused_kernel,
        grid=(T_pad // tm,),
        in_specs=[
            pl.BlockSpec((tm, d_model), lambda i: (i, 0)),
            pl.BlockSpec((d_model, C), lambda i: (0, 0)),   # resident weight
        ],
        out_specs=pl.BlockSpec((tm, C), lambda i: (i, 0)),
        out_shape=jax.ShapeDtypeStruct((T_pad, C), jnp.float32),
        compiler_params=pltpu.CompilerParams(
            dimension_semantics=("parallel",), vmem_limit_bytes=_VMEM_LIMIT),
    )(x_pad, w_all)


# ----------------------------------------------------------------------------
# Kernel 2: scaled-dot-product attention, all heads per grid step.
# grid = (mb,); key-padding mask built in-kernel from scalar-prefetched lengths.
# q is pre-scaled by 1/temper (folded into the Q weight).
# ----------------------------------------------------------------------------
def _attn_kernel(lens_ref, q_ref, k_ref, v_ref, out_ref, attn_ref):
    b = pl.program_id(0)
    n_valid = lens_ref[b]                       # scalar from SMEM
    q = q_ref[...]                              # (n_head, L, d_k)
    k = k_ref[...]                              # (n_head, L, d_k)
    v = v_ref[...]                              # (n_head, L, d_v)
    L = q.shape[1]
    # batched QK^T without materializing a transpose
    s = jnp.einsum("hqd,hkd->hqk", q, k, preferred_element_type=jnp.float32)
    key_pos = lax.broadcasted_iota(jnp.int32, (L, L), 1)
    s = jnp.where((key_pos < n_valid)[None, :, :], s, -1e30)  # finite mask (no NaN rows)
    s_max = jnp.max(s, axis=-1, keepdims=True)
    e = jnp.exp(s - s_max)
    denom = jnp.sum(e, axis=-1, keepdims=True)
    attn = e * pl.reciprocal(denom, approx=True)
    attn_ref[...] = attn
    out_ref[...] = jnp.einsum("hqk,hkd->hqd", attn, v,
                              preferred_element_type=jnp.float32)


def sdp_attention(q_pad, k_pad, v_pad, lens):
    n_head, mb, L, d_k = q_pad.shape
    d_v = v_pad.shape[-1]
    spec = lambda d: pl.BlockSpec((n_head, None, L, d), lambda b, lens_ref: (0, b, 0, 0))
    return pl.pallas_call(
        _attn_kernel,
        grid_spec=pltpu.PrefetchScalarGridSpec(
            num_scalar_prefetch=1,
            grid=(mb,),
            in_specs=[spec(d_k), spec(d_k), spec(d_v)],
            out_specs=[spec(d_v), spec(L)],
        ),
        out_shape=[
            jax.ShapeDtypeStruct((n_head, mb, L, d_v), jnp.float32),
            jax.ShapeDtypeStruct((n_head, mb, L, L), jnp.float32),
        ],
        compiler_params=pltpu.CompilerParams(
            dimension_semantics=("parallel",), vmem_limit_bytes=_VMEM_LIMIT),
    )(lens, q_pad, k_pad, v_pad)


# ----------------------------------------------------------------------------
# Kernel 3: output projection + residual + torch-style layer norm, row-tiled.
# ----------------------------------------------------------------------------
def _proj_ln_kernel(x_ref, w_ref, res_ref, a_ref, b_ref, out_ref, *, eps):
    y = jnp.dot(x_ref[...], w_ref[...], preferred_element_type=jnp.float32)
    z = y + res_ref[...]
    d_model = z.shape[-1]
    mu = jnp.mean(z, axis=-1, keepdims=True)
    d = z - mu
    var_unbiased = jnp.sum(d * d, axis=-1, keepdims=True) / (d_model - 1)
    sigma = jnp.sqrt(var_unbiased)
    inv = pl.reciprocal(sigma + eps, approx=True)
    out_ref[...] = d * inv * a_ref[...] + b_ref[...]


def proj_residual_layernorm(x_comb, w_proj, residual, a_2, b_2, tm, eps=1e-3):
    T_pad, hd = x_comb.shape
    d_model = w_proj.shape[-1]
    kern = lambda *refs: _proj_ln_kernel(*refs, eps=eps)
    return pl.pallas_call(
        kern,
        grid=(T_pad // tm,),
        in_specs=[
            pl.BlockSpec((tm, hd), lambda i: (i, 0)),
            pl.BlockSpec((hd, d_model), lambda i: (0, 0)),   # resident
            pl.BlockSpec((tm, d_model), lambda i: (i, 0)),
            pl.BlockSpec((1, d_model), lambda i: (0, 0)),    # resident
            pl.BlockSpec((1, d_model), lambda i: (0, 0)),    # resident
        ],
        out_specs=pl.BlockSpec((tm, d_model), lambda i: (i, 0)),
        out_shape=jax.ShapeDtypeStruct((T_pad, d_model), jnp.float32),
        compiler_params=pltpu.CompilerParams(
            dimension_semantics=("parallel",), vmem_limit_bytes=_VMEM_LIMIT),
    )(x_comb, w_proj, residual, a_2.reshape(1, -1), b_2.reshape(1, -1))


# ----------------------------------------------------------------------------
# Full forward (non-partitioned path, eval mode)
# ----------------------------------------------------------------------------
def multi_head_attention_forward(inp, lengths, params):
    """inp: (T_total, d_model) packed; lengths: python list of per-example lens."""
    n_head, d_model, d_k = params["w_qs"].shape
    d_v = params["w_vs"].shape[-1]
    lengths = [int(l) for l in lengths]
    T = int(sum(lengths))
    mb = len(lengths)
    L = max(lengths)
    assert inp.shape == (T, d_model)
    temper = float(d_model) ** 0.5

    # Row tiling: pad rows so T_pad % tm == 0 and there is >= 1 guaranteed zero
    # row (row index T) used as the padding source for q/k/v gathers.
    T_pad = _round_up(T + 1, 8)
    tm = min(256, T_pad)
    T_pad = _round_up(T_pad, tm)
    x_pad = jnp.zeros((T_pad, d_model), jnp.float32).at[:T].set(inp)

    # Fused QKV weight: (d_model, n_head*(2*d_k+d_v)); fold 1/temper into W_q.
    w_q = jnp.transpose(params["w_qs"], (1, 0, 2)).reshape(d_model, n_head * d_k) / temper
    w_k = jnp.transpose(params["w_ks"], (1, 0, 2)).reshape(d_model, n_head * d_k)
    w_v = jnp.transpose(params["w_vs"], (1, 0, 2)).reshape(d_model, n_head * d_v)
    w_all = jnp.concatenate([w_q, w_k, w_v], axis=1)

    # 1) fused QKV projection (Pallas)
    y_all = qkv_projection_fused(x_pad, w_all, tm)                 # (T_pad, C_all)
    q_h = jnp.transpose(y_all[:, :n_head * d_k].reshape(T_pad, n_head, d_k), (1, 0, 2))
    k_h = jnp.transpose(
        y_all[:, n_head * d_k:2 * n_head * d_k].reshape(T_pad, n_head, d_k), (1, 0, 2))
    v_h = jnp.transpose(
        y_all[:, 2 * n_head * d_k:].reshape(T_pad, n_head, d_v), (1, 0, 2))

    # 2) pad to (n_head, mb, L, d) with ONE static gather per tensor
    #    (padded slots map to the all-zero row T of the packed projections)
    bounds = np.concatenate([[0], np.cumsum(lengths)]).astype(np.int64)
    pad_idx = np.full((mb, L), T, dtype=np.int32)
    for b, l in enumerate(lengths):
        pad_idx[b, :l] = np.arange(bounds[b], bounds[b] + l, dtype=np.int32)
    pad_idx = jnp.asarray(pad_idx.reshape(-1))
    q_pad = jnp.take(q_h, pad_idx, axis=1).reshape(n_head, mb, L, d_k)
    k_pad = jnp.take(k_h, pad_idx, axis=1).reshape(n_head, mb, L, d_k)
    v_pad = jnp.take(v_h, pad_idx, axis=1).reshape(n_head, mb, L, d_v)

    # 3) attention (Pallas), lengths via scalar prefetch
    lens = jnp.asarray(np.array(lengths, dtype=np.int32))
    out_padded, attns_padded = sdp_attention(q_pad, k_pad, v_pad, lens)

    # 4) gather valid positions (one static gather), combine heads
    valid_idx = np.zeros((T_pad,), dtype=np.int32)
    valid_idx[:T] = np.concatenate(
        [b * L + np.arange(l, dtype=np.int32) for b, l in enumerate(lengths)])
    valid_idx = jnp.asarray(valid_idx)
    packed = jnp.take(out_padded.reshape(n_head, mb * L, d_v), valid_idx, axis=1)
    x_comb = jnp.transpose(packed, (1, 0, 2)).reshape(T_pad, n_head * d_v)

    # 5) projection + residual (+ identity FeatureDropout in eval) + layer norm
    out = proj_residual_layernorm(
        x_comb, params["w_proj_t"], x_pad, params["a_2"], params["b_2"], tm, eps=1e-3)
    out = out[:T]
    attns = attns_padded.reshape(n_head * mb, L, L)   # head-major, like the module
    return out, attns


# ----------------------------------------------------------------------------
# Pure-JAX / numpy reference for correctness check
# ----------------------------------------------------------------------------
def reference_forward(inp, lengths, params):
    n_head, d_model, d_k = params["w_qs"].shape
    d_v = params["w_vs"].shape[-1]
    lengths = [int(l) for l in lengths]
    mb, L, T = len(lengths), max(lengths), int(sum(lengths))
    x_rep = jnp.broadcast_to(inp, (n_head, T, d_model))
    q_s = jnp.einsum("htd,hdk->htk", x_rep, params["w_qs"])
    k_s = jnp.einsum("htd,hdk->htk", x_rep, params["w_ks"])
    v_s = jnp.einsum("htd,hdk->htk", x_rep, params["w_vs"])
    bounds = np.concatenate([[0], np.cumsum(lengths)])
    qp = np.zeros((n_head, mb, L, d_k), np.float32)
    kp = np.zeros((n_head, mb, L, d_k), np.float32)
    vp = np.zeros((n_head, mb, L, d_v), np.float32)
    inv = np.ones((mb, L), bool)
    for b, (s, e) in enumerate(zip(bounds[:-1], bounds[1:])):
        n = int(e - s)
        qp[:, b, :n] = np.asarray(q_s[:, s:e]); kp[:, b, :n] = np.asarray(k_s[:, s:e])
        vp[:, b, :n] = np.asarray(v_s[:, s:e]); inv[b, :n] = False
    qp = qp.reshape(-1, L, d_k); kp = kp.reshape(-1, L, d_k); vp = vp.reshape(-1, L, d_v)
    mask = np.tile(np.broadcast_to(inv[:, None, :], (mb, L, L)), (n_head, 1, 1))
    s = np.einsum("bqd,bkd->bqk", qp, kp) / (d_model ** 0.5)
    s = np.where(mask, -np.inf, s)
    attn = np.asarray(jax.nn.softmax(jnp.asarray(s), axis=-1))
    outp = np.einsum("bqk,bkd->bqd", attn, vp).reshape(n_head, mb, L, d_v)
    b_idx = np.concatenate([np.full(l, b) for b, l in enumerate(lengths)])
    p_idx = np.concatenate([np.arange(l) for l in lengths])
    packed = outp[:, b_idx, p_idx, :]
    x_comb = np.transpose(packed, (1, 0, 2)).reshape(T, n_head * d_v)
    z = x_comb @ np.asarray(params["w_proj_t"]) + np.asarray(inp)
    mu = z.mean(-1, keepdims=True)
    d = z - mu
    sigma = np.sqrt((d * d).sum(-1, keepdims=True) / (d_model - 1))
    out = d / (sigma + 1e-3) * np.asarray(params["a_2"]) + np.asarray(params["b_2"])
    return out, attn


if __name__ == "__main__":
    # Small, module-consistent shapes
    n_head, d_model, d_k, d_v = 2, 32, 16, 16
    lengths = [5, 7]                 # packed batch: T_total = 12
    T = sum(lengths)

    key = jax.random.PRNGKey(0)
    ks = jax.random.split(key, 5)
    xavier_std = (2.0 / (d_model + d_k)) ** 0.5
    params = {
        "w_qs": jax.random.normal(ks[0], (n_head, d_model, d_k), jnp.float32) * xavier_std,
        "w_ks": jax.random.normal(ks[1], (n_head, d_model, d_k), jnp.float32) * xavier_std,
        "w_vs": jax.random.normal(ks[2], (n_head, d_model, d_v), jnp.float32) * xavier_std,
        # torch Linear(n_head*d_v, d_model) computes x @ W.T; store W.T directly.
        "w_proj_t": jax.random.normal(ks[3], (n_head * d_v, d_model), jnp.float32)
        * (1.0 / (n_head * d_v) ** 0.5),
        "a_2": jnp.ones((d_model,), jnp.float32),
        "b_2": jnp.zeros((d_model,), jnp.float32),
    }
    inp = jax.random.normal(ks[4], (T, d_model), jnp.float32)

    out, attns = multi_head_attention_forward(inp, lengths, params)
    out = jax.block_until_ready(out)
    attns = jax.block_until_ready(attns)

    ref_out, ref_attn = reference_forward(inp, lengths, params)
    # Tolerance accounts for pl.reciprocal(approx=True) in softmax / layer norm.
    np.testing.assert_allclose(np.asarray(out), ref_out, rtol=2e-2, atol=2e-2)
    np.testing.assert_allclose(np.asarray(attns), ref_attn, rtol=2e-2, atol=2e-2)

    print("KERNEL_OK")
</pallas_src>

<mosaic_0001>
module attributes {stable_mosaic.version = 11 : i64} {
  func.func @_qkv_fused_kernel(%arg0: i32, %arg1: memref<16x32xf32, #tpu.memory_space<vmem>>, %arg2: memref<32x96xf32, #tpu.memory_space<vmem>>, %arg3: memref<16x96xf32, #tpu.memory_space<vmem>>) attributes {dimension_semantics = [#tpu.dimension_semantics<parallel>], iteration_bounds = array<i64: 1>, scalar_prefetch = 0 : i64, scratch_operands = 0 : i64, tpu.core_type = #tpu.core_type<tc>, window_params = [{transform_indices = @transform_0, window_bounds = array<i64: 16, 32>}, {pipeline_mode = #tpu.pipeline_mode<synchronous>, transform_indices = @transform_1, window_bounds = array<i64: 32, 96>}, {transform_indices = @transform_2, window_bounds = array<i64: 16, 96>}]} {
    %c0 = arith.constant 0 : index
    %c0_0 = arith.constant 0 : index
    %0 = vector.load %arg1[%c0, %c0_0] : memref<16x32xf32, #tpu.memory_space<vmem>>, vector<16x32xf32>
    %c0_1 = arith.constant 0 : index
    %c0_2 = arith.constant 0 : index
    %1 = vector.load %arg2[%c0_1, %c0_2] : memref<32x96xf32, #tpu.memory_space<vmem>>, vector<32x96xf32>
    %cst = arith.constant dense<0.000000e+00> : vector<16x96xf32>
    %2 = tpu.matmul %0, %1, %cst {dimension_numbers = #tpu.dot_dimension_numbers<[1], [0], [0], [1], [0, 0, 1, 1], [], []>} : vector<16x32xf32>, vector<32x96xf32>, vector<16x96xf32> -> vector<16x96xf32>
    %c0_3 = arith.constant 0 : index
    %c0_4 = arith.constant 0 : index
    %3 = vector.load %arg3[%c0_3, %c0_4] : memref<16x96xf32, #tpu.memory_space<vmem>>, vector<16x96xf32>
    tpu.vector_store %arg3[%c0_3, %c0_4], %2 {strides = array<i32>} : memref<16x96xf32, #tpu.memory_space<vmem>>, vector<16x96xf32>,
    return
  }
  func.func @transform_0(%arg0: i32) -> (i32, i32) {
    %c0_i32 = arith.constant 0 : i32
    %c0_i32_0 = arith.constant 0 : i32
    return %arg0, %c0_i32 : i32, i32
  }
  func.func @transform_1(%arg0: i32) -> (i32, i32) {
    %c0_i32 = arith.constant 0 : i32
    %c0_i32_0 = arith.constant 0 : i32
    %c0_i32_1 = arith.constant 0 : i32
    return %c0_i32, %c0_i32_0 : i32, i32
  }
  func.func @transform_2(%arg0: i32) -> (i32, i32) {
    %c0_i32 = arith.constant 0 : i32
    %c0_i32_0 = arith.constant 0 : i32
    return %arg0, %c0_i32 : i32, i32
  }
}

</mosaic_0001>

<bundles_post_ra>
// kernel: tpu_custom_call.1
= control target key start
LH: loop header
LB: loop body
LE: loop exit
PB: predicated region body
PF: predicated region fallthrough
CT: control target
= control target key end

     0   :  { %7 = vsyncpa [#allocation3], 0  ;;  %s230_s0 = inlined_call_operand.hbm [shape: f32[16,32], index: 0, kind: input, shape index: {}]   ;;  %s231_s1 = inlined_call_operand.hbm [shape: f32[32,96], index: 1, kind: input, shape index: {}]   ;;  %s232_s2 = inlined_call_operand.hbm [shape: f32[16,96], index: 2, kind: output, shape index: {}]  }
   0x1   :  { %8 = vsyncpa [#allocation6], 0 }
   0x2   :  { %9 = vsyncpa [#allocation4], 0  ;;  %s14_s11 = sshll.u32 %s230_s0, 4  ;;  %s192_s12 = smov [#allocation2]   ;;  %s15_s11 = int_to_ptr.hbm [resolvable:$true] %s14_s11 }
   0x3   :  { %s16_s13 = sshll.u32 %s192_s12, 4  ;;  %s27_s16 = sshll.u32 %s231_s1, 4  ;;  %s17_s13 = int_to_ptr.vmem [resolvable:$true] %s16_s13  ;;  %s28_s16 = int_to_ptr.hbm [resolvable:$true] %s27_s16 }
   0x4   :  { %s193_s17 = smov 128   ;;  %s194_s18 = smov 8  }
   0x5   :  { %22 = dma.hbm_to_vmem [thread:$0]  %s15_s11, 256, %s17_s13, [#allocation3], %s193_s17, %s193_s17, %s194_s18  }
   0x6   :  { %s195_s19 = smov [#allocation5]  }
   0x7   :  { %s29_s20 = sshll.u32 %s195_s19, 4  ;;  %s30_s20 = int_to_ptr.vmem [resolvable:$true] %s29_s20 }
   0x8   :  { %35 = dma.hbm_to_vmem [thread:$0]  %s28_s16, 512, %s30_s20, [#allocation6], %s193_s17, %s193_s17, %s194_s18  }
   0x9   :  { %186 = dma.done.wait [#allocation3], 256  }
   0xa   :  { %187 = vsyncadd [#allocation3], 4294967040 }
   0xb   :  { %188 = dma.done.wait [#allocation6], 512  }
   0xc   :  { %189 = vsyncadd [#allocation6], 4294966784  ;;  %v49_v0 = vld [vmem:[#allocation5 + $0x18] sm:$0xff]  ;;  %v48_v1 = vld [vmem:[#allocation5 + $0x10] sm:$0xff]  ;;  %vm50_vm0 = vcmask 261120   ;;  %s196_s0 = smov [#allocation7]  }
   0xd   :  { %69 = vmatpush.msra.mxu0 %v49_v0  ;;  %105 = vmatpush.msra.mxu1 %v49_v0  ;;  %v47_v2 = vld [vmem:[#allocation5 + $0x8] sm:$0xff]  ;;  %v46_v3 = vld [vmem:[#allocation5] sm:$0xff]  ;;  %v44_v4 = vld [vmem:[#allocation2] sm:$0xff]  ;;  %s87_s1 = sshll.u32 %s196_s0, 4  ;;  %s89_s23 = sshll.u32 %s232_s2, 4  ;;  %vm80_vm1 = vcmask 785408   ;;  %s88_s1 = int_to_ptr.vmem [resolvable:$true] %s87_s1  ;;  %s90_s23 = int_to_ptr.hbm [resolvable:$true] %s89_s23 }
   0xe   :  { %v45_v5 = vld [vmem:[#allocation2 + $0x8] sm:$0xff] }
   0xf   :  { %70 = vmatpush.msra.mxu0 %v48_v1  ;;  %106 = vmatpush.msra.mxu1 %v48_v1 }
  0x11   :  { %71 = vmatpush.msra.mxu0 %v47_v2  ;;  %107 = vmatpush.msra.mxu1 %v47_v2 }
  0x13   :  { %72 = vmatpush.msra.mxu0 %v46_v3  ;;  %108 = vmatpush.msra.mxu1 %v46_v3 }
  0x14   :  { %103 = vmatmul.msk.f32.vlgmr.msra.gmra.mxu0 %vm50_vm0, %v44_v4  ;;  %104 = vmatmul.msk.f32.vlgmr.msra.gmra.mxu1 %vm50_vm0, %v45_v5 }
  0x91   :  { %v74_v6 = vpop.f32.mrf.mxu0  ;;  %v77_v7 = vpop.f32.mrf.mxu1 }
  0x92   :  { %81 = vst.msk [vmem:[#allocation7] sm:$0xff] %vm80_vm1, %v74_v6 }
  0x93   :  { %82 = vst.msk [vmem:[#allocation7 + $0x8] sm:$0xff] %vm80_vm1, %v77_v7 }
  0x94   :  { %95 = dma.vmem_to_hbm [thread:$0]  %s88_s1, 256, %s90_s23, [#allocation4], %s193_s17, %s193_s17, %s194_s18  }
  0x95   :  { %190 = dma.done.wait [#allocation4], 256  }
  0x96   :  { %191 = vsyncadd [#allocation4], 4294967040 }
  0x97   :  { %100 = vsyncpa [#allocation3], 1 }
  0x98   :  { %101 = vsyncpa [#allocation6], 1 }
  0x99   :  { %102 = vsyncpa [#allocation4], 1 }

</bundles_post_ra>
